<compile_context>
chip_gen: v6e
topology: v6e:2x2x1
jax: 0.10.0
libtpu: 0.0.40
codegen_flags: <defaults>
</compile_context>

<pallas_src>
import functools

import jax
import jax.numpy as jnp
from jax.experimental import pallas as pl
from jax.experimental.pallas import tpu as pltpu


# ----------------------------------------------------------------------------
# Kernels
# ----------------------------------------------------------------------------
def _fused_kernel(x_ref, w1_ref, w2_ref, y_ref, *, inv_hw):
    """Whole (C, HWp) slab resident: pool -> FC -> ReLU -> FC -> sigmoid -> mul."""
    x = x_ref[0]                                                   # (C, HWp) native dtype
    # Force f32 accumulation of the spatial sum (bf16 accumulation over large
    # HW loses precision).  Padded lanes are zero, so the sum is exact.
    pooled = jnp.sum(x.astype(jnp.float32), axis=1, keepdims=True) * inv_hw  # (C, 1)
    hidden = jnp.maximum(
        jnp.dot(w1_ref[...], pooled, preferred_element_type=jnp.float32), 0.0)  # (Cr, 1)
    logits = jnp.dot(w2_ref[...], hidden, preferred_element_type=jnp.float32)   # (C, 1)
    att = 1.0 / (1.0 + jnp.exp(-logits))                           # sigmoid, f32
    # Multiply in native dtype (output is stored in that dtype anyway); avoids
    # materializing a second full-slab f32 copy in VMEM.
    y_ref[0] = x * att.astype(x.dtype)


def _pool_kernel(x_ref, psum_ref):
    """Tiled partial spatial sum.  grid = (B, split, hw_tiles).

    Accumulates directly into the output ref, which is resident across the
    last ('arbitrary') grid axis -- no VMEM scratch needed.
    """
    @pl.when(pl.program_id(2) == 0)
    def _():
        psum_ref[...] = jnp.zeros_like(psum_ref)

    psum_ref[0, 0] += jnp.sum(x_ref[0].astype(jnp.float32), axis=1, keepdims=True)


def _mul_kernel(x_ref, att_ref, y_ref):
    """y = x * att (att broadcast over the lane/spatial axis), native dtype."""
    y_ref[0] = x_ref[0] * att_ref[0]


# ----------------------------------------------------------------------------
# Tiling helpers
# ----------------------------------------------------------------------------
def _pick_hw_tile(hwp, c, dtype_bytes, target_bytes):
    """Largest multiple of 128 dividing hwp with C*T*dtype_bytes <= target."""
    assert hwp % 128 == 0
    max_t = max(128, (target_bytes // max(1, c * dtype_bytes)) // 128 * 128)
    best = 128
    t = 128
    limit = min(max_t, hwp)
    while t <= limit:
        if hwp % t == 0:
            best = t
        t += 128
    return min(best, hwp)


# ----------------------------------------------------------------------------
# Wrapper
# ----------------------------------------------------------------------------
def channel_attention_forward(
    x, w1, w2, *,
    fuse_max_slab_bytes=4 * 1024 * 1024,   # per-batch (C, HWp) slab budget for fusion
    tile_target_bytes=2 * 1024 * 1024,     # block size target for the tiled path
    vmem_limit_bytes=32 * 1024 * 1024,     # explicit scoped-VMEM budget (all gens)
):
    """Pallas equivalent of LightweightChannelAttention.forward.

    x  : (B, C, H, W)
    w1 : (C_reduced, C)  -- first 1x1 conv weight (bias=False)
    w2 : (C, C_reduced)  -- second 1x1 conv weight (bias=False)
    returns (B, C, H, W) = x * sigmoid(fc(avg_pool(x))), in x.dtype.
    """
    B, C, H, W = x.shape
    hw = H * W
    cr = w1.shape[0]
    dt = x.dtype
    dbytes = x.dtype.itemsize
    inv_hw = 1.0 / hw

    # Flatten spatial; zero-pad the lane axis to a multiple of 128 so all
    # blocks are lane-dense and bounded (no full-HW fallback block).
    hwp = ((hw + 127) // 128) * 128
    xf = x.reshape(B, C, hw)
    if hwp != hw:
        xf = jnp.pad(xf, ((0, 0), (0, 0), (0, hwp - hw)))

    # Weights are tiny; keep the FC math in f32.
    w1f = w1.astype(jnp.float32)
    w2f = w2.astype(jnp.float32)

    slab_bytes = C * hwp * dbytes

    if slab_bytes <= fuse_max_slab_bytes:
        # ------------------------------------------------------------------
        # Fused single pass: read x once, write y once (~2x tensor bytes).
        # ------------------------------------------------------------------
        y = pl.pallas_call(
            functools.partial(_fused_kernel, inv_hw=inv_hw),
            out_shape=jax.ShapeDtypeStruct((B, C, hwp), dt),
            grid_spec=pltpu.PrefetchScalarGridSpec(
                num_scalar_prefetch=0,
                grid=(B,),
                in_specs=[
                    pl.BlockSpec((1, C, hwp), lambda b: (b, 0, 0)),
                    pl.BlockSpec((cr, C), lambda b: (0, 0)),
                    pl.BlockSpec((C, cr), lambda b: (0, 0)),
                ],
                out_specs=pl.BlockSpec((1, C, hwp), lambda b: (b, 0, 0)),
            ),
            compiler_params=pltpu.CompilerParams(
                dimension_semantics=("parallel",),
                vmem_limit_bytes=vmem_limit_bytes),
        )(xf, w1f, w2f)
    else:
        # ------------------------------------------------------------------
        # Two-pass tiled fallback for large (C, HW) slabs.
        # ------------------------------------------------------------------
        T = _pick_hw_tile(hwp, C, dbytes, tile_target_bytes)
        nt = hwp // T
        # Split the reduction into 2 parallel partial sums when possible so
        # both TensorCores (v7x megacore) stay busy even for B=1.
        split = 2 if (nt % 2 == 0 and nt >= 2) else 1
        nts = nt // split

        psum = pl.pallas_call(
            _pool_kernel,
            out_shape=jax.ShapeDtypeStruct((B, split, C, 1), jnp.float32),
            grid_spec=pltpu.PrefetchScalarGridSpec(
                num_scalar_prefetch=0,
                grid=(B, split, nts),
                in_specs=[
                    pl.BlockSpec((1, C, T), lambda b, s, t: (b, 0, s * nts + t)),
                ],
                out_specs=pl.BlockSpec((1, 1, C, 1), lambda b, s, t: (b, s, 0, 0)),
            ),
            compiler_params=pltpu.CompilerParams(
                dimension_semantics=("parallel", "parallel", "arbitrary"),
                vmem_limit_bytes=vmem_limit_bytes),
        )(xf)

        # Tiny FCs + sigmoid on the (B, C) pooled vector: negligible work,
        # plain XLA keeps the pooling kernel simple and fully parallel.
        pooled = jnp.sum(psum, axis=1)[:, :, 0] * inv_hw           # (B, C) f32
        hidden = jnp.maximum(pooled @ w1f.T, 0.0)                  # (B, Cr)
        att = 1.0 / (1.0 + jnp.exp(-(hidden @ w2f.T)))             # (B, C)
        att = att.astype(dt).reshape(B, C, 1)

        y = pl.pallas_call(
            _mul_kernel,
            out_shape=jax.ShapeDtypeStruct((B, C, hwp), dt),
            grid_spec=pltpu.PrefetchScalarGridSpec(
                num_scalar_prefetch=0,
                grid=(B, nt),
                in_specs=[
                    pl.BlockSpec((1, C, T), lambda b, t: (b, 0, t)),
                    pl.BlockSpec((1, C, 1), lambda b, t: (b, 0, 0)),
                ],
                out_specs=pl.BlockSpec((1, C, T), lambda b, t: (b, 0, t)),
            ),
            compiler_params=pltpu.CompilerParams(
                dimension_semantics=("parallel", "parallel"),
                vmem_limit_bytes=vmem_limit_bytes),
        )(xf, att)

    if hwp != hw:
        y = y[:, :, :hw]
    return y.reshape(B, C, H, W)


# ----------------------------------------------------------------------------
# Reference & test
# ----------------------------------------------------------------------------
def _reference(x, w1, w2):
    """Pure-JAX reference for verification."""
    pooled = jnp.mean(x.astype(jnp.float32), axis=(2, 3))      # (B, C)
    hidden = jax.nn.relu(jnp.einsum("rc,bc->br", w1, pooled))
    att = jax.nn.sigmoid(jnp.einsum("cr,br->bc", w2, hidden))
    return (x * att[:, :, None, None].astype(x.dtype)).astype(x.dtype)


if __name__ == "__main__":
    # Module-consistent config: channels=32, reduction_ratio=16 -> reduced=2.
    CHANNELS = 32
    REDUCTION_RATIO = 16
    REDUCED = max(2, CHANNELS // REDUCTION_RATIO)

    key = jax.random.PRNGKey(0)
    k1, k2, kx1, kx2 = jax.random.split(key, 4)

    w1 = jax.random.normal(k1, (REDUCED, CHANNELS), jnp.float32) * 0.1
    w2 = jax.random.normal(k2, (CHANNELS, REDUCED), jnp.float32) * 0.1

    # Case 1: HW multiple of 128, small slab -> fused single-pass path.
    x1 = jax.random.normal(kx1, (2, CHANNELS, 16, 16), jnp.float32)
    y1 = jax.block_until_ready(channel_attention_forward(x1, w1, w2))
    ref1 = _reference(x1, w1, w2)
    assert y1.shape == ref1.shape and y1.dtype == ref1.dtype
    assert jnp.allclose(y1, ref1, atol=1e-5, rtol=1e-5), "fused path mismatch"

    # Case 2: HW=400 (not a multiple of 128 -> exercises lane zero-padding);
    # force the two-pass tiled path with 128-wide tiles (exercises the split
    # partial-sum reduction and the multiply pass).
    x2 = jax.random.normal(kx2, (2, CHANNELS, 20, 20), jnp.float32)
    y2 = jax.block_until_ready(channel_attention_forward(
        x2, w1, w2, fuse_max_slab_bytes=0, tile_target_bytes=1))
    ref2 = _reference(x2, w1, w2)
    assert y2.shape == ref2.shape and y2.dtype == ref2.dtype
    assert jnp.allclose(y2, ref2, atol=1e-5, rtol=1e-5), "tiled path mismatch"

    print("KERNEL_OK")
</pallas_src>

<mosaic_0001>
module attributes {stable_mosaic.version = 11 : i64} {
  func.func @_fused_kernel(%arg0: i32, %arg1: memref<1x32x256xf32, #tpu.memory_space<vmem>>, %arg2: memref<2x32xf32, #tpu.memory_space<vmem>>, %arg3: memref<32x2xf32, #tpu.memory_space<vmem>>, %arg4: memref<1x32x256xf32, #tpu.memory_space<vmem>>) attributes {dimension_semantics = [#tpu.dimension_semantics<parallel>], iteration_bounds = array<i64: 2>, scalar_prefetch = 0 : i64, scratch_operands = 0 : i64, tpu.core_type = #tpu.core_type<tc>, window_params = [{transform_indices = @transform_0, window_bounds = array<i64: 1, 32, 256>}, {pipeline_mode = #tpu.pipeline_mode<synchronous>, transform_indices = @transform_1, window_bounds = array<i64: 2, 32>}, {pipeline_mode = #tpu.pipeline_mode<synchronous>, transform_indices = @transform_2, window_bounds = array<i64: 32, 2>}, {transform_indices = @transform_3, window_bounds = array<i64: 1, 32, 256>}]} {
    %c0 = arith.constant 0 : index
    %c0_0 = arith.constant 0 : index
    %c0_1 = arith.constant 0 : index
    %0 = vector.load %arg1[%c0, %c0_0, %c0_1] : memref<1x32x256xf32, #tpu.memory_space<vmem>>, vector<1x32x256xf32>
    %1 = vector.shape_cast %0 : vector<1x32x256xf32> to vector<32x256xf32>
    %cst = arith.constant dense<0.000000e+00> : vector<32xf32>
    %2 = vector.multi_reduction <add>, %1, %cst [1] : vector<32x256xf32> to vector<32xf32>
    %3 = vector.shape_cast %2 : vector<32xf32> to vector<32x1xf32>
    %cst_2 = arith.constant 3.906250e-03 : f32
    %4 = vector.broadcast %cst_2 : f32 to vector<32x1xf32>
    %5 = arith.mulf %3, %4 : vector<32x1xf32>
    %c0_3 = arith.constant 0 : index
    %c0_4 = arith.constant 0 : index
    %6 = vector.load %arg2[%c0_3, %c0_4] : memref<2x32xf32, #tpu.memory_space<vmem>>, vector<2x32xf32>
    %cst_5 = arith.constant dense<0.000000e+00> : vector<2x1xf32>
    %7 = tpu.matmul %6, %5, %cst_5 {dimension_numbers = #tpu.dot_dimension_numbers<[1], [0], [0], [1], [0, 0, 1, 1], [], []>} : vector<2x32xf32>, vector<32x1xf32>, vector<2x1xf32> -> vector<2x1xf32>
    %cst_6 = arith.constant 0.000000e+00 : f32
    %8 = vector.broadcast %cst_6 : f32 to vector<2x1xf32>
    %9 = arith.maximumf %7, %8 : vector<2x1xf32>
    %c0_7 = arith.constant 0 : index
    %c0_8 = arith.constant 0 : index
    %10 = vector.load %arg3[%c0_7, %c0_8] : memref<32x2xf32, #tpu.memory_space<vmem>>, vector<32x2xf32>
    %cst_9 = arith.constant dense<0.000000e+00> : vector<32x1xf32>
    %11 = tpu.matmul %10, %9, %cst_9 {dimension_numbers = #tpu.dot_dimension_numbers<[1], [0], [0], [1], [0, 0, 1, 1], [], []>} : vector<32x2xf32>, vector<2x1xf32>, vector<32x1xf32> -> vector<32x1xf32>
    %cst_10 = arith.constant 0.000000e+00 : f32
    %12 = vector.broadcast %cst_10 : f32 to vector<32x1xf32>
    %13 = arith.subf %12, %11 : vector<32x1xf32>
    %14 = math.exp %13 : vector<32x1xf32>
    %cst_11 = arith.constant 1.000000e+00 : f32
    %15 = vector.broadcast %cst_11 : f32 to vector<32x1xf32>
    %16 = arith.addf %15, %14 : vector<32x1xf32>
    %cst_12 = arith.constant 1.000000e+00 : f32
    %17 = vector.broadcast %cst_12 : f32 to vector<32x1xf32>
    %18 = arith.divf %17, %16 : vector<32x1xf32>
    %19 = vector.broadcast %18 : vector<32x1xf32> to vector<32x256xf32>
    %20 = arith.mulf %1, %19 : vector<32x256xf32>
    %c0_13 = arith.constant 0 : index
    %c0_14 = arith.constant 0 : index
    %c0_15 = arith.constant 0 : index
    %21 = vector.load %arg4[%c0_13, %c0_14, %c0_15] : memref<1x32x256xf32, #tpu.memory_space<vmem>>, vector<1x32x256xf32>
    %22 = vector.shape_cast %21 : vector<1x32x256xf32> to vector<32x256xf32>
    %23 = vector.shape_cast %20 : vector<32x256xf32> to vector<1x32x256xf32>
    tpu.vector_store %arg4[%c0_13, %c0_14, %c0_15], %23 {strides = array<i32>} : memref<1x32x256xf32, #tpu.memory_space<vmem>>, vector<1x32x256xf32>,
    return
  }
  func.func @transform_0(%arg0: i32) -> (i32, i32, i32) {
    %c0_i32 = arith.constant 0 : i32
    %c0_i32_0 = arith.constant 0 : i32
    %c0_i32_1 = arith.constant 0 : i32
    return %arg0, %c0_i32, %c0_i32_0 : i32, i32, i32
  }
  func.func @transform_1(%arg0: i32) -> (i32, i32) {
    %c0_i32 = arith.constant 0 : i32
    %c0_i32_0 = arith.constant 0 : i32
    %c0_i32_1 = arith.constant 0 : i32
    return %c0_i32, %c0_i32_0 : i32, i32
  }
  func.func @transform_2(%arg0: i32) -> (i32, i32) {
    %c0_i32 = arith.constant 0 : i32
    %c0_i32_0 = arith.constant 0 : i32
    %c0_i32_1 = arith.constant 0 : i32
    return %c0_i32, %c0_i32_0 : i32, i32
  }
  func.func @transform_3(%arg0: i32) -> (i32, i32, i32) {
    %c0_i32 = arith.constant 0 : i32
    %c0_i32_0 = arith.constant 0 : i32
    %c0_i32_1 = arith.constant 0 : i32
    return %arg0, %c0_i32, %c0_i32_0 : i32, i32, i32
  }
}

</mosaic_0001>

<bundles_post_ra>
// kernel: tpu_custom_call.1
= control target key start
LH: loop header
LB: loop body
LE: loop exit
PB: predicated region body
PF: predicated region fallthrough
CT: control target
= control target key end

     0   :  { %8 = vsyncpa [#allocation3], 0  ;;  %s992_s0 = inlined_call_operand.hbm [shape: f32[2,32,256], index: 0, kind: input, shape index: {}]   ;;  %s993_s1 = inlined_call_operand.vmem [shape: f32[2,32], index: 1, kind: input, shape index: {}]   ;;  %s994_s2 = inlined_call_operand.vmem [shape: f32[32,2], index: 2, kind: input, shape index: {}]   ;;  %s995_s3 = inlined_call_operand.hbm [shape: f32[2,32,256], index: 3, kind: output, shape index: {}]  }
   0x1   :  { %10 = vsyncpa [#allocation3 + $0x1], 0 }
   0x2   :  { %11 = vsyncpa [#allocation4], 0 }
   0x3   :  { %13 = vsyncpa [#allocation4 + $0x1], 0  ;;  %s787_s12 = smov 0   ;;  %s789_s13 = smov 0  }
   0x4   :  { %s791_s14 = smov 0   ;;  %s793_s15 = smov 0  }
   0x5 LB: > { %s808_s16 = sadd.s32 4294967295, %s756_s15   ;;  %s542_s17 = sadd.s32 4294967294, %s756_s15   ;;  %s756_s15 = sphi %s793_s15, %s1010_s15   ;;  %s752_s14 = sphi %s791_s14, %s1009_s14   ;;  %s748_s13 = sphi %s789_s13, %s1008_s13   ;;  %s744_s12 = sphi %s787_s12, %s1007_s12  }
   0x6   : > { %s812_s18 = sadd.s32 1, %s756_s15   ;;  %s26_s19 = sadd.s32 1, %s752_s14 }
   0x7   : > { %s23_s20 = ssub.s32 %s756_s15, %s812_s18  ;;  %p33_p0 = scmp.ne.s32.totalorder %s752_s14, %s748_s13 }
   0x8   : > { %p24_p1 = scmp.eq.s32.totalorder %s23_s20, 0  ;;  %p34_p2 = scmp.eq.s32.totalorder %s756_s15, 0 }
   0x9   : > { %p39_p3 = scmp.ne.s32.totalorder %s748_s13, %s744_s12  ;;  %p40_p4 = scmp.eq.s32.totalorder %s808_s16, 0 }
   0xa   : > { %s824_s21 = scalar_select %p24_p1, %s752_s14, %s26_s19  }
   0xb   : > { %p826_p5 = por %p34_p2, %p33_p0  ;;  %p830_p6 = por %p40_p4, %p39_p3 }
   0xc   : > { %p105_p7 = scmp.eq.s32.totalorder %s808_s16, 1  ;;  %p111_p8 = scmp.eq.s32.totalorder %s542_s17, 1 }
   0xd   : > { %s999_s23 = scalar_select %p830_p6, 1, 0 }
   0xe   : > { %p605_p10 = scmp.lt.s32.totalorder %s756_s15, 2  ;;  %p837_p11 = por %p105_p7, %p33_p0 }
   0xf   : > { %p841_p12 = por %p111_p8, %p39_p3  ;;  %s137_s26 = sand.u32 1, %s752_s14  }
  0x10   : > { %s1000_s24 = scalar_select %p837_p11, 1, 0 }
  0x11   : > { %s1001_s25 = scalar_select %p841_p12, 1, 0 }
  0x12   : > { %s562_s27 = sshll.u32 %s756_s15, 10  ;;  %s545_s28 = sshll.u32 %s137_s26, 6 }
  0x13   : > { %s850_s4 = scalar_lea.hbm %s992_s0, %s562_s27  ;;  %s141_s5 = scalar_lea.vmem [#allocation2], %s545_s28 }
  0x14   : > { %s148_s6 = sshll.u32 %s141_s5, 4  ;;  %p854_p13 = pnand %p605_p10, %p826_p5  ;;  %s858_s6 = int_to_ptr.vmem [resolvable:$true] %s148_s6 }
  0x15   : > { %s860_s8 = scalar_lea.sflag [#allocation3], %s137_s26  ;;  %s664_s9 = scalar_lea.hbm %s850_s4, 1024 }
  0x16   : > { %p665_p0 = scmp.ne.s32.totalorder %s850_s4, %s664_s9  ;;  %p666_p1 = pneg %p854_p13 }
  0x17   : > { %s669_s17 = scalar_lea.hbm %s992_s0, 2048  ;;  %p670_p4 = scmp.lt.s32.totalorder %s850_s4, %s992_s0 }
  0x18   : > { %p667_p2 = pnand %p666_p1, %p665_p0  ;;  %p671_p5 = scmp.lt.s32.totalorder %s669_s17, %s664_s9 }
  0x1a   : > { %p668_p3 = pneg %p667_p2  ;;  %p672_p7 = por %p671_p5, %p670_p4 }
  0x1c   : > { %p673_p8 = pnand %p672_p7, %p668_p3 }
  0x1e   : > { %676 = shalt.err (!%p673_p8)
}
  0x1f   : > { %s677_s22 = scalar_lea.vmem %s858_s6, 1024  ;;  %s758_s26 = smov [#allocation2]  }
  0x20   : > { %p678_p10 = scmp.ne.s32.totalorder %s858_s6, %s677_s22  ;;  %s682_s27 = sshll.u32 %s758_s26, 4  ;;  %s683_s27 = int_to_ptr.vmem [resolvable:$false] %s682_s27 }
  0x21   : > { %s684_s28 = scalar_lea.vmem %s683_s27, 2048  ;;  %p685_p2 = scmp.lt.s32.totalorder %s858_s6, %s683_s27 }
  0x22   : > { %p680_p9 = pnand %p678_p10, %p666_p1  ;;  %p686_p12 = scmp.lt.s32.totalorder %s684_s28, %s677_s22 }
  0x24   : > { %p681_p0 = pneg %p680_p9  ;;  %p687_p11 = por %p686_p12, %p685_p2 }
  0x26   : > { %p688_p6 = pnand %p687_p11, %p681_p0 }
  0x28   : > { %691 = shalt.err (!%p688_p6)
}
  0x29   : > { %s759_s29 = smov 256   ;;  %s760_s30 = smov 16  }
  0x2a   : > { %600 = dma.hbm_to_vmem [thread:$0]  (!%p854_p13), %s850_s4, 1024, %s858_s6, %s860_s8, %s759_s29, %s759_s29, %s760_s30  }
  0x2b   : > { %p548_p9 = scmp.ge.s32.totalorder %s756_s15, 1  ;;  %p156_p1 = scmp.lt.s32.totalorder %s756_s15, 3 }
  0x2d   : > { %p157_p3 = pnand %p548_p9, %p156_p1 }
  0x2e   : > { %s884_s5 = sand.u32 (!%p157_p3), 1, %s748_s13   ;;  %p1003_p6 = scmp.ne.s32.totalorder (!%p157_p3), %s999_s23, 0 }
  0x2f   : > { %160 = sbr.rel (%p157_p3) target bundleno = 779 (0x30b), region = 32  ;;  %s549_s9 = sshll.u32 (!%p157_p3), %s884_s5, 6 }
  0x30   : > { %s163_s10 = scalar_lea.sflag (!%p157_p3), [#allocation3], %s884_s5  ;;  %s166_s11 = scalar_lea.vmem (!%p157_p3), [#allocation2], %s549_s9 }
  0x34   : > { %735 = dma.done.wait (%p1003_p6), %s163_s10, 1024  }
  0x35   : > { %737 = vsyncadd (%p1003_p6), %s163_s10, 4294966272  ;;  %v894_v0 = vld [vmem:[%s166_s11 + $0x30] sm:$0xff]  ;;  %v896_v1 = vld [vmem:[%s166_s11 + $0x38] sm:$0xff]  ;;  %v761_v12 = vmov 0.0   ;;  %vm762_vm0 = vmmov 0   ;;  %vm214_vm1 = vcmask 261120  }
  0x36   : > { %v898_v2 = vld [vmem:[%s166_s11 + $0x20] sm:$0xff]  ;;  %v206_v3 = vadd.f32 %v896_v1, %v894_v0  ;;  %v902_v4 = vld [vmem:[%s166_s11 + $0x28] sm:$0xff]  ;;  %v904_v5 = vld [vmem:[%s166_s11 + $0x10] sm:$0xff]  ;;  %574 = vmatprep.subr.mxu0 %v761_v12  ;;  %582 = vmatprep.mubr.msk.f32.mxu0 %vm762_vm0, %v761_v12  ;;  %vm293_vm2 = vcmask 15360   ;;  %vm306_vm3 = vcmask 1041408   ;;  %v763_v29 = vmov 0  }
  0x37   : > { %v906_v6 = vld [vmem:[%s166_s11 + $0x18] sm:$0xff]  ;;  %v910_v8 = vld [vmem:[%s166_s11] sm:$0xff]  ;;  %v912_v9 = vld [vmem:[%s166_s11 + $0x8] sm:$0xff]  ;;  %v203_v10 = vadd.f32 %v902_v4, %v898_v2  ;;  %647 = vset.pattern.permute.xlu1 %v763_v29  ;;  %646 = vset.pattern.permute.xlu0 %v763_v29  ;;  %s188_s27 = scalar_lea.vmem [#allocation5], %s549_s9  ;;  %s563_s29 = sshll.u32 %s808_s16, 10 }
  0x38   : > { %v200_v7 = vadd.f32 %v906_v6, %v904_v5  ;;  %207 = vadd.xlane.f32.xlu0 %v206_v3  ;;  %v197_v11 = vadd.f32 %v912_v9, %v910_v8  ;;  %v213_v21 = vld [vmem:[%s993_s1] sm:$0x3]  ;;  %v290_v26 = vld [vmem:[%s994_s2 + $0x8] sm:$0xff]  ;;  %v291_v27 = vld [vmem:[%s994_s2 + $0x10] sm:$0xff]  ;;  %s469_s28 = sshll.u32 %s188_s27, 4  ;;  %s947_s10 = scalar_lea.hbm %s995_s3, %s563_s29  ;;  %s942_s28 = int_to_ptr.vmem [resolvable:$true] %s469_s28 }
  0x39   : > { %v289_v22 = vld [vmem:[%s994_s2] sm:$0xff]  ;;  %v292_v28 = vld [vmem:[%s994_s2 + $0x18] sm:$0xff]  ;;  %s456_s16 = scalar_lea.sflag [#allocation4], %s884_s5  ;;  %s692_s11 = scalar_lea.vmem %s942_s28, 1024 }
  0x3a   : > { %201 = vadd.xlane.f32.xlu1 %v200_v7  ;;  %587 = vmatprep.mubr.msk.f32.mxu1 %vm293_vm2, %v289_v22  ;;  %p693_p11 = scmp.ne.s32.totalorder %s942_s28, %s692_s11  ;;  %p1004_p12 = scmp.ne.s32.totalorder %s1000_s24, 0 }
  0x3b   : > { %s764_s23 = smov [#allocation5]  }
  0x3c   : > { %204 = vadd.xlane.f32.xlu0 %v203_v10  ;;  %p694_p13 = pnand %p693_p11, %p1004_p12  ;;  %s696_s4 = sshll.u32 %s764_s23, 4  ;;  %s697_s4 = int_to_ptr.vmem [resolvable:$false] %s696_s4 }
  0x3d   : > { %s698_s6 = scalar_lea.vmem %s697_s4, 2048  ;;  %p699_p5 = scmp.lt.s32.totalorder %s942_s28, %s697_s4 }
  0x3e   : > { %198 = vadd.xlane.f32.xlu1 %v197_v11  ;;  %p695_p4 = pneg %p694_p13  ;;  %p700_p7 = scmp.lt.s32.totalorder %s698_s6, %s692_s11 }
  0x40   : > { %p701_p8 = por %p700_p7, %p699_p5 }
  0x42   : > { %p702_p10 = pnand %p701_p8, %p695_p4 }
  0xc1   : > { %v208_v13 = vpop.xlane.xlu0 %207 }
  0xc2   : > { %v212_v14 = vmul.f32 0.00390625, %v208_v13 }
  0xc3   : > { %v202_v15 = vpop.xlane.xlu1 %201 }
  0xc4   : > { %575 = vmatpush3.msra.mxu0 %v212_v14  ;;  %v210_v19 = vmul.f32 0.00390625, %v202_v15 }
  0xc5   : > { %v205_v16 = vpop.xlane.xlu0 %204  ;;  %576 = vmatprep.subr.mxu0 %v761_v12 }
  0xc6   : > { %v211_v17 = vmul.f32 0.00390625, %v205_v16 }
  0xc7   : > { %v199_v18 = vpop.xlane.xlu1 %198 }
  0xc8   : > { %577 = vmatpush3.msra.mxu0 %v211_v17  ;;  %v209_v20 = vmul.f32 0.00390625, %v199_v18 }
  0xc9   : > { %578 = vmatprep.subr.mxu0 %v761_v12 }
  0xca   : > { %579 = vmatpush3.msra.mxu0 %v210_v19 }
  0xcb   : > { %580 = vmatprep.subr.mxu0 %v761_v12 }
  0xcc   : > { %581 = vmatpush3.msra.mxu0 %v209_v20 }
  0xcd   : > { %583 = vmatmul.mubr.msk.f32.vlgmr.msra.gmra.mxu0 %vm214_vm1, %v213_v21 }
 0x18d   : > { %v284_v23 = vpop.f32.mrf.mxu0 }
 0x18e   : > { %v288_v24 = vmax.f32 %v284_v23, 0.0 }
 0x18f   : > { %v584_v25 = vpop.f32.mrf.mxu0 }
 0x190   : > { %585 = vmatprep.subr.msk.mxu1 %vm306_vm3, %v288_v24 }
 0x191   : > { %586 = vmatpush3.msk.msra.mxu1 %vm306_vm3, %v288_v24 }
 0x192   : > { %588 = vmatmul.mubr.msk.f32.vlgmr.msra.gmra.mxu1 %vm293_vm2, %v290_v26 }
 0x193   : > { %590 = vmatprep.mubr.msk.f32.mxu1 %vm293_vm2, %v291_v27 }
 0x196   : > { %591 = vmatmul.mubr.msk.f32.gmra.mxu1 %vm293_vm2, %v292_v28 }
 0x252   : > { %v589_v30 = vpop.f32.mrf.mxu1 }
 0x253   : > { %v396_v31 = vsub.f32 0.0, %v589_v30 }
 0x254   : > { %v376_v32 = vpop.f32.mrf.mxu1 }
 0x255   : > { %v401_v33 = vmul.f32 1.442695, %v396_v31  ;;  %v395_v34 = vsub.f32 0.0, %v376_v32 }
 0x256   : > { %v592_v35 = vpop.f32.mrf.mxu1 }
 0x257   : > { %648 = vpow2.f32 %v401_v33  ;;  %v399_v36 = vmul.f32 1.442695, %v395_v34  ;;  %v398_v37 = vsub.f32 0.0, %v592_v35 }
 0x258   : > { %v386_v38 = vpop.f32.mrf.mxu1 }
 0x259   : > { %650 = vpow2.f32 %v399_v36  ;;  %v405_v39 = vmul.f32 1.442695, %v398_v37  ;;  %v397_v40 = vsub.f32 0.0, %v386_v38 }
 0x25b   : > { %v403_v41 = vmul.f32 1.442695, %v397_v40  ;;  %652 = vpow2.f32 %v405_v39 }
 0x25d   : > { %654 = vpow2.f32 %v403_v41 }
 0x264   : > { %v649_v42 = vpop.eup %648 }
 0x265   : > { %v408_v43 = vadd.f32 1.0, %v649_v42 }
 0x266   : > { %v651_v44 = vpop.eup %650 }
 0x267   : > { %656 = vrcp.f32 %v408_v43  ;;  %v407_v45 = vadd.f32 1.0, %v651_v44 }
 0x268   : > { %v653_v46 = vpop.eup %652 }
 0x269   : > { %658 = vrcp.f32 %v407_v45  ;;  %v410_v49 = vadd.f32 1.0, %v653_v46 }
 0x26a   : > { %v655_v47 = vpop.eup %654 }
 0x26b   : > { %v409_v48 = vadd.f32 1.0, %v655_v47 }
 0x26d   : > { %660 = vrcp.f32 %v409_v48 }
 0x26e   : > { %662 = vrcp.f32 %v410_v49 }
 0x274   : > { %v657_v50 = vpop.eup %656 }
 0x275   : > { %426 = vperm.xlu1 %647, %v657_v50  }
 0x276   : > { %v659_v51 = vpop.eup %658 }
 0x277   : > { %421 = vperm.xlu0 %646, %v659_v51  }
 0x27a   : > { %v661_v52 = vpop.eup %660 }
 0x27b   : > { %431 = vperm.xlu1 %647, %v661_v52   ;;  %v663_v53 = vpop.eup %662 }
 0x27f   : > { %436 = vperm.xlu1 %647, %v663_v53  }
 0x2f0   : > { %v427_v54 = vpop.permute.xlu1 %426 }
 0x2f1   : > { %v441_v55 = vmul.f32 %v427_v54, %v904_v5  ;;  %v442_v56 = vmul.f32 %v427_v54, %v906_v6 }
 0x2f2   : > { %v422_v57 = vpop.permute.xlu0 %421 }
 0x2f3   : > { %449 = vst [vmem:[%s188_s27 + $0x10] sm:$0xff] %v441_v55  ;;  %450 = vst [vmem:[%s188_s27 + $0x18] sm:$0xff] %v442_v56  ;;  %v439_v58 = vmul.f32 %v422_v57, %v910_v8  ;;  %v440_v59 = vmul.f32 %v422_v57, %v912_v9 }
 0x2f5   : > { %447 = vst [vmem:[%s188_s27] sm:$0xff] %v439_v58  ;;  %448 = vst [vmem:[%s188_s27 + $0x8] sm:$0xff] %v440_v59 }
 0x2f6   : > { %v432_v60 = vpop.permute.xlu1 %431 }
 0x2f7   : > { %v443_v61 = vmul.f32 %v432_v60, %v898_v2  ;;  %v444_v62 = vmul.f32 %v432_v60, %v902_v4 }
 0x2f9   : > { %451 = vst [vmem:[%s188_s27 + $0x20] sm:$0xff] %v443_v61  ;;  %452 = vst [vmem:[%s188_s27 + $0x28] sm:$0xff] %v444_v62 }
 0x2fa   : > { %v437_v63 = vpop.permute.xlu1 %436 }
 0x2fb   : > { %v445_v3 = vmul.f32 %v437_v63, %v894_v0  ;;  %v446_v2 = vmul.f32 %v437_v63, %v896_v1 }
 0x2fd   : > { %453 = vst [vmem:[%s188_s27 + $0x30] sm:$0xff] %v445_v3  ;;  %454 = vst [vmem:[%s188_s27 + $0x38] sm:$0xff] %v446_v2 }
 0x2fe   : > { %705 = shalt.err (!%p702_p10)
}
 0x2ff   : > { %s706_s7 = scalar_lea.hbm %s947_s10, 1024  ;;  %s710_s19 = scalar_lea.hbm %s995_s3, 2048 }
 0x300   : > { %p707_p0 = scmp.ne.s32.totalorder %s947_s10, %s706_s7  ;;  %p711_p1 = scmp.lt.s32.totalorder %s947_s10, %s995_s3 }
 0x301   : > { %p712_p3 = scmp.lt.s32.totalorder %s710_s19, %s706_s7 }
 0x302   : > { %p708_p2 = pnand %p707_p0, %p1004_p12 }
 0x303   : > { %p713_p6 = por %p712_p3, %p711_p1 }
 0x304   : > { %p709_p9 = pneg %p708_p2 }
 0x306   : > { %p714_p11 = pnand %p713_p6, %p709_p9 }
 0x308   : > { %717 = shalt.err (!%p714_p11)
}
 0x309   : > { %s765_s26 = smov 256   ;;  %s766_s27 = smov 16  }
 0x30a   : > { %595 = dma.vmem_to_hbm [thread:$0]  (%p1004_p12), %s942_s28, 1024, %s947_s10, %s456_s16, %s765_s26, %s765_s26, %s766_s27  }
 0x30b PF: > { %s484_s29 = sand.u32 1, %s744_s12   ;;  %p1005_p13 = scmp.ne.s32.totalorder %s1001_s25, 0 }
 0x30c   : > { %p1006_p4 = scmp.ge.s32.totalorder %s756_s15, 2  ;;  %s485_s30 = scalar_lea.sflag [#allocation4], %s484_s29 }
 0x30e   : > { %p602_p5 = pnand %p1006_p4, %p1005_p13 }
 0x310   : > { %p603_p7 = pneg %p602_p5 }
 0x312   : > { %739 = dma.done.wait (%p603_p7), %s485_s30, 1024  }
 0x313   : > { %741 = vsyncadd (%p603_p7), %s485_s30, 4294966272  ;;  %p16_p8 = scmp.ge.s32.totalorder %s812_s18, 4   ;;  %s1007_s12 = smov %s748_s13 }
 0x314   : > { %s1008_s13 = smov %s752_s14  ;;  %s1009_s14 = smov %s824_s21 }
 0x315   : > { %s1010_s15 = smov %s812_s18  ;;  %18 = sbr.rel (!%p16_p8) target bundleno = 5 (0x5), region = 77 }
 0x31a   :  { %490 = vsyncpa [#allocation3], 1 }
 0x31b   :  { %492 = vsyncpa [#allocation3 + $0x1], 1 }
 0x31c   :  { %493 = vsyncpa [#allocation4], 1 }
 0x31d   :  { %495 = vsyncpa [#allocation4 + $0x1], 1 }

</bundles_post_ra>
